<compile_context>
chip_gen: v7x
topology: tpu7x:2x2x1
jax: 0.10.0
libtpu: 0.0.40
codegen_flags: <defaults>
</compile_context>

<pallas_src>
import functools

import jax
import jax.numpy as jnp
from jax.experimental import pallas as pl
from jax.experimental.pallas import tpu as pltpu


NEG_SLOPE = 0.01          # F.leaky_relu default negative_slope
D_IN, D_H, D_OUT = 64, 256, 784


def _leaky_relu(x):
    # Single vmax instead of compare+select (valid since NEG_SLOPE < 1).
    return jnp.maximum(x, NEG_SLOPE * x)


def _round_up(n, m):
    return ((n + m - 1) // m) * m


def _cdiv(a, b):
    return -(-a // b)


def _default_bf16_eltwise():
    """bf16 tanh only where the EUP/VPU have bf16 (v6e / v7x); f32 elsewhere."""
    try:
        kind = jax.devices()[0].device_kind.lower()
    except Exception:
        return False
    return not any(g in kind for g in ("v2", "v3", "v4", "v5"))


def _choose_tiling(B, tb_max):
    """Pick (tb, b_pad, n_steps) with tiny padding waste and >=2 even steps
    when possible (v7x megacore load balance)."""
    B8 = _round_up(B, 8)                 # minimum padded batch (waste < 8 rows)
    n = _cdiv(B8, tb_max)
    if B8 >= 16:
        n = max(n, 2)                    # give both TensorCores work on v7x
        if n % 2:
            n += 1                       # even step count -> balanced cores
    tb = _round_up(_cdiv(B8, n), 8)
    b_pad = n * tb
    return tb, b_pad, n


def generator_kernel(x_ref, w1_ref, b1_ref, w2_ref, b2_ref, w3_ref, b3_ref,
                     o_ref, *, bf16_eltwise):
    # x: (tb, 64) f32 latent tile. Weights are bf16; accumulate in f32 on MXU.
    x = x_ref[...]

    h1 = jnp.dot(x.astype(jnp.bfloat16), w1_ref[...],
                 preferred_element_type=jnp.float32)
    h1 = _leaky_relu(h1 + b1_ref[...])

    h2 = jnp.dot(h1.astype(jnp.bfloat16), w2_ref[...],
                 preferred_element_type=jnp.float32)
    h2 = _leaky_relu(h2 + b2_ref[...])

    h3 = jnp.dot(h2.astype(jnp.bfloat16), w3_ref[...],
                 preferred_element_type=jnp.float32)
    z = h3 + b3_ref[...]
    if bf16_eltwise:                      # static Python bool (trace time)
        z = z.astype(jnp.bfloat16)        # bf16 EUP tanh on v6e/v7x
    o_ref[...] = jnp.tanh(z).astype(o_ref.dtype)


def generator_forward(x, kernel_params, *, tb_max=1024,
                      out_dtype=jnp.bfloat16, bf16_eltwise=None):
    """x: (B, 64) float32 -> (B, 784) `out_dtype` (default bf16).

    kernel_params = (w1_bf16, b1_f32, w2_bf16, b2_f32, w3_bf16, b3_f32),
    weights stored (in, out) so the kernel computes y = x @ W + b.
    """
    w1, b1, w2, b2, w3, b3 = kernel_params
    B = x.shape[0]
    if bf16_eltwise is None:
        bf16_eltwise = _default_bf16_eltwise()

    tb, b_pad, n_steps = _choose_tiling(B, tb_max)
    if b_pad != B:
        x = jnp.pad(x, ((0, b_pad - B), (0, 0)))

    # Activations walk the batch grid; weights/biases stay VMEM-resident.
    act_spec = lambda d: pl.BlockSpec((tb, d), lambda i: (i, 0))
    resident = lambda a: pl.BlockSpec(a.shape, lambda i: (0, 0))

    kernel = functools.partial(generator_kernel, bf16_eltwise=bf16_eltwise)

    out = pl.pallas_call(
        kernel,
        out_shape=jax.ShapeDtypeStruct((b_pad, D_OUT), out_dtype),
        grid=(n_steps,),
        in_specs=[act_spec(D_IN),
                  resident(w1), resident(b1),
                  resident(w2), resident(b2),
                  resident(w3), resident(b3)],
        out_specs=act_spec(D_OUT),
        compiler_params=pltpu.CompilerParams(
            dimension_semantics=("parallel",)),
    )(x, w1, b1, w2, b2, w3, b3)

    if b_pad != B:
        out = out[:B]
    return out


def init_params(key):
    """Deterministic synthetic parameters matching the nn.Linear shapes.

    PyTorch weights are (out, in); we store the transpose (in, out) so the
    kernel computes y = x @ W + b. Returned in f32 (reference dtype).
    """
    k1, k2, k3, k4, k5, k6 = jax.random.split(key, 6)
    w1 = jax.random.normal(k1, (D_IN, D_H), jnp.float32) * 0.05
    b1 = jax.random.normal(k2, (1, D_H), jnp.float32) * 0.05
    w2 = jax.random.normal(k3, (D_H, D_H), jnp.float32) * 0.05
    b2 = jax.random.normal(k4, (1, D_H), jnp.float32) * 0.05
    w3 = jax.random.normal(k5, (D_H, D_OUT), jnp.float32) * 0.05
    b3 = jax.random.normal(k6, (1, D_OUT), jnp.float32) * 0.05
    return (w1, b1, w2, b2, w3, b3)


def prepare_kernel_params(params):
    """f32 reference params -> kernel params (bf16 weights, f32 biases)."""
    w1, b1, w2, b2, w3, b3 = params
    return (w1.astype(jnp.bfloat16), b1,
            w2.astype(jnp.bfloat16), b2,
            w3.astype(jnp.bfloat16), b3)


def reference_forward(x, params):
    """Pure-JAX f32 reference matching the PyTorch forward."""
    w1, b1, w2, b2, w3, b3 = params
    h = jnp.where(x @ w1 + b1 > 0, x @ w1 + b1, NEG_SLOPE * (x @ w1 + b1))
    h = jnp.where(h @ w2 + b2 > 0, h @ w2 + b2, NEG_SLOPE * (h @ w2 + b2))
    return jnp.tanh(h @ w3 + b3)


if __name__ == "__main__":
    key = jax.random.PRNGKey(0)
    kx, kp = jax.random.split(key)
    params = init_params(kp)
    kernel_params = prepare_kernel_params(params)

    # Small latent batch, plus a ragged batch to exercise the padding path.
    for batch in (8, 50):
        x = jax.random.normal(jax.random.fold_in(kx, batch), (batch, D_IN),
                              jnp.float32)
        out = generator_forward(x, kernel_params)
        out = jax.block_until_ready(out)

        ref = reference_forward(x, params)
        assert out.shape == (batch, D_OUT), out.shape
        # bf16 matmul operands + bf16 output (f32 accumulation) -> loosened
        # tolerance vs the f32 reference.
        assert jnp.allclose(out.astype(jnp.float32), ref,
                            atol=3e-2, rtol=3e-2), "mismatch vs reference"

    print("KERNEL_OK")
</pallas_src>

<mosaic_0001>
module attributes {stable_mosaic.version = 11 : i64} {
  func.func @generator_kernel(%arg0: i32, %arg1: memref<8x64xf32, #tpu.memory_space<vmem>>, %arg2: memref<64x256xbf16, #tpu.memory_space<vmem>>, %arg3: memref<1x256xf32, #tpu.memory_space<vmem>>, %arg4: memref<256x256xbf16, #tpu.memory_space<vmem>>, %arg5: memref<1x256xf32, #tpu.memory_space<vmem>>, %arg6: memref<256x784xbf16, #tpu.memory_space<vmem>>, %arg7: memref<1x784xf32, #tpu.memory_space<vmem>>, %arg8: memref<8x784xbf16, #tpu.memory_space<vmem>>) attributes {dimension_semantics = [#tpu.dimension_semantics<parallel>], iteration_bounds = array<i64: 1>, scalar_prefetch = 0 : i64, scratch_operands = 0 : i64, tpu.core_type = #tpu.core_type<tc>, window_params = [{transform_indices = @transform_0, window_bounds = array<i64: 8, 64>}, {pipeline_mode = #tpu.pipeline_mode<synchronous>, transform_indices = @transform_1, window_bounds = array<i64: 64, 256>}, {pipeline_mode = #tpu.pipeline_mode<synchronous>, transform_indices = @transform_2, window_bounds = array<i64: 1, 256>}, {pipeline_mode = #tpu.pipeline_mode<synchronous>, transform_indices = @transform_3, window_bounds = array<i64: 256, 256>}, {pipeline_mode = #tpu.pipeline_mode<synchronous>, transform_indices = @transform_4, window_bounds = array<i64: 1, 256>}, {pipeline_mode = #tpu.pipeline_mode<synchronous>, transform_indices = @transform_5, window_bounds = array<i64: 256, 784>}, {pipeline_mode = #tpu.pipeline_mode<synchronous>, transform_indices = @transform_6, window_bounds = array<i64: 1, 784>}, {transform_indices = @transform_7, window_bounds = array<i64: 8, 784>}]} {
    %c0 = arith.constant 0 : index
    %c0_0 = arith.constant 0 : index
    %0 = vector.load %arg1[%c0, %c0_0] : memref<8x64xf32, #tpu.memory_space<vmem>>, vector<8x64xf32>
    %1 = arith.truncf %0 : vector<8x64xf32> to vector<8x64xbf16>
    %c0_1 = arith.constant 0 : index
    %c0_2 = arith.constant 0 : index
    %2 = vector.load %arg2[%c0_1, %c0_2] : memref<64x256xbf16, #tpu.memory_space<vmem>>, vector<64x256xbf16>
    %cst = arith.constant dense<0.000000e+00> : vector<8x256xf32>
    %3 = tpu.matmul %1, %2, %cst {dimension_numbers = #tpu.dot_dimension_numbers<[1], [0], [0], [1], [0, 0, 1, 1], [], []>} : vector<8x64xbf16>, vector<64x256xbf16>, vector<8x256xf32> -> vector<8x256xf32>
    %c0_3 = arith.constant 0 : index
    %c0_4 = arith.constant 0 : index
    %4 = vector.load %arg3[%c0_3, %c0_4] : memref<1x256xf32, #tpu.memory_space<vmem>>, vector<1x256xf32>
    %5 = vector.broadcast %4 : vector<1x256xf32> to vector<8x256xf32>
    %6 = arith.addf %3, %5 : vector<8x256xf32>
    %cst_5 = arith.constant 0.00999999977 : f32
    %7 = vector.broadcast %cst_5 : f32 to vector<8x256xf32>
    %8 = arith.mulf %7, %6 : vector<8x256xf32>
    %9 = arith.maximumf %6, %8 : vector<8x256xf32>
    %10 = arith.truncf %9 : vector<8x256xf32> to vector<8x256xbf16>
    %c0_6 = arith.constant 0 : index
    %c0_7 = arith.constant 0 : index
    %11 = vector.load %arg4[%c0_6, %c0_7] : memref<256x256xbf16, #tpu.memory_space<vmem>>, vector<256x256xbf16>
    %cst_8 = arith.constant dense<0.000000e+00> : vector<8x256xf32>
    %12 = tpu.matmul %10, %11, %cst_8 {dimension_numbers = #tpu.dot_dimension_numbers<[1], [0], [0], [1], [0, 0, 1, 1], [], []>} : vector<8x256xbf16>, vector<256x256xbf16>, vector<8x256xf32> -> vector<8x256xf32>
    %c0_9 = arith.constant 0 : index
    %c0_10 = arith.constant 0 : index
    %13 = vector.load %arg5[%c0_9, %c0_10] : memref<1x256xf32, #tpu.memory_space<vmem>>, vector<1x256xf32>
    %14 = vector.broadcast %13 : vector<1x256xf32> to vector<8x256xf32>
    %15 = arith.addf %12, %14 : vector<8x256xf32>
    %cst_11 = arith.constant 0.00999999977 : f32
    %16 = vector.broadcast %cst_11 : f32 to vector<8x256xf32>
    %17 = arith.mulf %16, %15 : vector<8x256xf32>
    %18 = arith.maximumf %15, %17 : vector<8x256xf32>
    %19 = arith.truncf %18 : vector<8x256xf32> to vector<8x256xbf16>
    %c0_12 = arith.constant 0 : index
    %c0_13 = arith.constant 0 : index
    %20 = vector.load %arg6[%c0_12, %c0_13] : memref<256x784xbf16, #tpu.memory_space<vmem>>, vector<256x784xbf16>
    %cst_14 = arith.constant dense<0.000000e+00> : vector<8x784xf32>
    %21 = tpu.matmul %19, %20, %cst_14 {dimension_numbers = #tpu.dot_dimension_numbers<[1], [0], [0], [1], [0, 0, 1, 1], [], []>} : vector<8x256xbf16>, vector<256x784xbf16>, vector<8x784xf32> -> vector<8x784xf32>
    %c0_15 = arith.constant 0 : index
    %c0_16 = arith.constant 0 : index
    %22 = vector.load %arg7[%c0_15, %c0_16] : memref<1x784xf32, #tpu.memory_space<vmem>>, vector<1x784xf32>
    %23 = vector.broadcast %22 : vector<1x784xf32> to vector<8x784xf32>
    %24 = arith.addf %21, %23 : vector<8x784xf32>
    %25 = arith.truncf %24 : vector<8x784xf32> to vector<8x784xbf16>
    %26 = math.tanh %25 : vector<8x784xbf16>
    %c0_17 = arith.constant 0 : index
    %c0_18 = arith.constant 0 : index
    %27 = vector.load %arg8[%c0_17, %c0_18] : memref<8x784xbf16, #tpu.memory_space<vmem>>, vector<8x784xbf16>
    tpu.vector_store %arg8[%c0_17, %c0_18], %26 {strides = array<i32>} : memref<8x784xbf16, #tpu.memory_space<vmem>>, vector<8x784xbf16>,
    return
  }
  func.func @transform_0(%arg0: i32) -> (i32, i32) {
    %c0_i32 = arith.constant 0 : i32
    %c0_i32_0 = arith.constant 0 : i32
    return %arg0, %c0_i32 : i32, i32
  }
  func.func @transform_1(%arg0: i32) -> (i32, i32) {
    %c0_i32 = arith.constant 0 : i32
    %c0_i32_0 = arith.constant 0 : i32
    %c0_i32_1 = arith.constant 0 : i32
    return %c0_i32, %c0_i32_0 : i32, i32
  }
  func.func @transform_2(%arg0: i32) -> (i32, i32) {
    %c0_i32 = arith.constant 0 : i32
    %c0_i32_0 = arith.constant 0 : i32
    %c0_i32_1 = arith.constant 0 : i32
    return %c0_i32, %c0_i32_0 : i32, i32
  }
  func.func @transform_3(%arg0: i32) -> (i32, i32) {
    %c0_i32 = arith.constant 0 : i32
    %c0_i32_0 = arith.constant 0 : i32
    %c0_i32_1 = arith.constant 0 : i32
    return %c0_i32, %c0_i32_0 : i32, i32
  }
  func.func @transform_4(%arg0: i32) -> (i32, i32) {
    %c0_i32 = arith.constant 0 : i32
    %c0_i32_0 = arith.constant 0 : i32
    %c0_i32_1 = arith.constant 0 : i32
    return %c0_i32, %c0_i32_0 : i32, i32
  }
  func.func @transform_5(%arg0: i32) -> (i32, i32) {
    %c0_i32 = arith.constant 0 : i32
    %c0_i32_0 = arith.constant 0 : i32
    %c0_i32_1 = arith.constant 0 : i32
    return %c0_i32, %c0_i32_0 : i32, i32
  }
  func.func @transform_6(%arg0: i32) -> (i32, i32) {
    %c0_i32 = arith.constant 0 : i32
    %c0_i32_0 = arith.constant 0 : i32
    %c0_i32_1 = arith.constant 0 : i32
    return %c0_i32, %c0_i32_0 : i32, i32
  }
  func.func @transform_7(%arg0: i32) -> (i32, i32) {
    %c0_i32 = arith.constant 0 : i32
    %c0_i32_0 = arith.constant 0 : i32
    return %arg0, %c0_i32 : i32, i32
  }
}

</mosaic_0001>

<bundles_post_ra>
// kernel: tpu_custom_call.1
= control target key start
LH: loop header
LB: loop body
LE: loop exit
PB: predicated region body
PF: predicated region fallthrough
CT: control target
= control target key end

     0   :  { %v1790_v2 = vmov 0   ;;  %vm90_vm0 = vcmask 523264   ;;  %s2337_s0 = inlined_call_operand.vmem [shape: f32[8,64], index: 0, kind: input, shape index: {}]   ;;  %s2338_s1 = inlined_call_operand.vmem [shape: bf16[64,256], index: 1, kind: input, shape index: {}]   ;;  %s2339_s2 = inlined_call_operand.vmem [shape: f32[1,256], index: 2, kind: input, shape index: {}]   ;;  %s2340_s3 = inlined_call_operand.vmem [shape: bf16[256,256], index: 3, kind: input, shape index: {}]   ;;  %s2341_s4 = inlined_call_operand.vmem [shape: f32[1,256], index: 4, kind: input, shape index: {}]   ;;  %s2342_s5 = inlined_call_operand.vmem [shape: bf16[256,784], index: 5, kind: input, shape index: {}]   ;;  %s2343_s6 = inlined_call_operand.vmem [shape: f32[1,784], index: 6, kind: input, shape index: {}]   ;;  %s2344_s7 = inlined_call_operand.hbm [shape: bf16[8,784], index: 7, kind: output, shape index: {}]  }
   0x1   :  { %v1532_v0 = vld [vmem:[%s2338_s1 + $0x4] ss:$8 sps:$4 sm:$0xff]   ;;  %v1534_v1 = vld [vmem:[%s2338_s1] ss:$8 sps:$4 sm:$0xff]   ;;  %126 = vmatprep.mubr.bf16.mxu0 %v1790_v2  ;;  %v1535_v3 = vld [vmem:[%s2338_s1 + $0x14] ss:$8 sps:$4 sm:$0xff]  }
   0x2   :  { %94 = vmatprep.subr.bf16.mxu0 %v1532_v0  ;;  %v1537_v4 = vld [vmem:[%s2338_s1 + $0x10] ss:$8 sps:$4 sm:$0xff]   ;;  %v1538_v5 = vld [vmem:[%s2338_s1 + $0x24] ss:$8 sps:$4 sm:$0xff]   ;;  %v1540_v6 = vld [vmem:[%s2338_s1 + $0x20] ss:$8 sps:$4 sm:$0xff]  }
   0x3   :  { %95 = vmatpush1.bf16.msra.mxu0 %v1534_v1  ;;  %v1544_v7 = vld [vmem:[%s2340_s3 + $0x4] ss:$8 sps:$4 sm:$0xff]   ;;  %v1546_v8 = vld [vmem:[%s2340_s3] ss:$8 sps:$4 sm:$0xff]   ;;  %v1547_v9 = vld [vmem:[%s2340_s3 + $0x14] ss:$8 sps:$4 sm:$0xff]  }
   0x4   :  { %96 = vmatprep.subr.bf16.mxu0 %v1535_v3  ;;  %v1541_v10 = vld [vmem:[%s2338_s1 + $0x34] ss:$8 sps:$4 sm:$0xff]   ;;  %345 = vmatprep.subr.bf16.mxu1 %v1544_v7  ;;  %v1549_v11 = vld [vmem:[%s2340_s3 + $0x10] ss:$8 sps:$4 sm:$0xff]   ;;  %v1550_v13 = vld [vmem:[%s2340_s3 + $0x24] ss:$8 sps:$4 sm:$0xff]  }
   0x5   :  { %346 = vmatpush1.bf16.msra.mxu1 %v1546_v8  ;;  %v1543_v12 = vld [vmem:[%s2338_s1 + $0x30] ss:$8 sps:$4 sm:$0xff]   ;;  %v28_v14 = vld [vmem:[%s2337_s0] sm:$0xff]  ;;  %v1553_v17 = vld [vmem:[%s2340_s3 + $0x34] ss:$8 sps:$4 sm:$0xff]  }
   0x6   :  { %347 = vmatprep.subr.bf16.mxu1 %v1547_v9  ;;  %v1552_v15 = vld [vmem:[%s2340_s3 + $0x20] ss:$8 sps:$4 sm:$0xff]   ;;  %v29_v16 = vpack.c.bf16 %v28_v14, %v28_v14  ;;  %v1555_v18 = vld [vmem:[%s2340_s3 + $0x30] ss:$8 sps:$4 sm:$0xff]   ;;  %v1556_v19 = vld [vmem:[%s2340_s3 + $0x44] ss:$8 sps:$4 sm:$0xff]  }
   0x7   :  { %97 = vmatpush1.bf16.msra.mxu0 %v1537_v4  ;;  %v1558_v20 = vld [vmem:[%s2340_s3 + $0x40] ss:$8 sps:$4 sm:$0xff]   ;;  %v1559_v21 = vld [vmem:[%s2340_s3 + $0x54] ss:$8 sps:$4 sm:$0xff]   ;;  %v1561_v22 = vld [vmem:[%s2340_s3 + $0x50] ss:$8 sps:$4 sm:$0xff]  }
   0x8   :  { %98 = vmatprep.subr.bf16.mxu0 %v1538_v5  ;;  %v1562_v23 = vld [vmem:[%s2340_s3 + $0x64] ss:$8 sps:$4 sm:$0xff]   ;;  %v1564_v24 = vld [vmem:[%s2340_s3 + $0x60] ss:$8 sps:$4 sm:$0xff]   ;;  %v1565_v25 = vld [vmem:[%s2340_s3 + $0x74] ss:$8 sps:$4 sm:$0xff]  }
   0x9   :  { %348 = vmatpush1.bf16.msra.mxu1 %v1549_v11  ;;  %v1567_v26 = vld [vmem:[%s2340_s3 + $0x70] ss:$8 sps:$4 sm:$0xff]   ;;  %v1568_v27 = vld [vmem:[%s2340_s3 + $0x84] ss:$8 sps:$4 sm:$0xff]   ;;  %v1570_v28 = vld [vmem:[%s2340_s3 + $0x80] ss:$8 sps:$4 sm:$0xff]  }
   0xa   :  { %349 = vmatprep.subr.bf16.mxu1 %v1550_v13  ;;  %v1571_v29 = vld [vmem:[%s2340_s3 + $0x94] ss:$8 sps:$4 sm:$0xff]   ;;  %v1573_v30 = vld [vmem:[%s2340_s3 + $0x90] ss:$8 sps:$4 sm:$0xff]   ;;  %v1574_v31 = vld [vmem:[%s2340_s3 + $0xa4] ss:$8 sps:$4 sm:$0xff]  }
   0xb   :  { %99 = vmatpush1.bf16.msra.mxu0 %v1540_v6  ;;  %v1576_v32 = vld [vmem:[%s2340_s3 + $0xa0] ss:$8 sps:$4 sm:$0xff]   ;;  %v1577_v33 = vld [vmem:[%s2340_s3 + $0xb4] ss:$8 sps:$4 sm:$0xff]   ;;  %v1579_v34 = vld [vmem:[%s2340_s3 + $0xb0] ss:$8 sps:$4 sm:$0xff]  }
   0xc   :  { %100 = vmatprep.subr.bf16.mxu0 %v1541_v10  ;;  %v1580_v35 = vld [vmem:[%s2340_s3 + $0xc4] ss:$8 sps:$4 sm:$0xff]   ;;  %v1582_v36 = vld [vmem:[%s2340_s3 + $0xc0] ss:$8 sps:$4 sm:$0xff]   ;;  %v1583_v37 = vld [vmem:[%s2340_s3 + $0xd4] ss:$8 sps:$4 sm:$0xff]  }
   0xd   :  { %350 = vmatpush1.bf16.msra.mxu1 %v1552_v15 }
   0xe   :  { %351 = vmatprep.subr.bf16.mxu1 %v1553_v17 }
   0xf   :  { %101 = vmatpush1.bf16.msra.mxu0 %v1543_v12 }
  0x11   :  { %352 = vmatpush1.bf16.msra.mxu1 %v1555_v18 }
  0x12   :  { %1359 = vmatmul.mubr.msk.bf16.vlgmr.msra.gmra.mrb[0].mxu0 %vm90_vm0, %v29_v16  ;;  %353 = vmatprep.subr.bf16.mxu1 %v1556_v19 }
  0x15   :  { %354 = vmatpush1.bf16.msra.mxu1 %v1558_v20 }
  0x16   :  { %355 = vmatprep.subr.bf16.mxu1 %v1559_v21 }
  0x19   :  { %356 = vmatpush1.bf16.msra.mxu1 %v1561_v22 }
  0x1a   :  { %357 = vmatprep.subr.bf16.mxu1 %v1562_v23 }
  0x1d   :  { %358 = vmatpush1.bf16.msra.mxu1 %v1564_v24 }
  0x1e   :  { %359 = vmatprep.subr.bf16.mxu1 %v1565_v25 }
  0x21   :  { %360 = vmatpush1.bf16.msra.mxu1 %v1567_v26 }
  0x22   :  { %361 = vmatprep.subr.bf16.mxu1 %v1568_v27 }
  0x25   :  { %362 = vmatpush1.bf16.msra.mxu1 %v1570_v28 }
  0x26   :  { %363 = vmatprep.subr.bf16.mxu1 %v1571_v29 }
  0x29   :  { %364 = vmatpush1.bf16.msra.mxu1 %v1573_v30 }
  0x2a   :  { %365 = vmatprep.subr.bf16.mxu1 %v1574_v31 }
  0x2d   :  { %366 = vmatpush1.bf16.msra.mxu1 %v1576_v32 }
  0x2e   :  { %367 = vmatprep.subr.bf16.mxu1 %v1577_v33 }
  0x31   :  { %368 = vmatpush1.bf16.msra.mxu1 %v1579_v34 }
  0x32   :  { %369 = vmatprep.subr.bf16.mxu1 %v1580_v35 }
  0x35   :  { %370 = vmatpush1.bf16.msra.mxu1 %v1582_v36 }
  0x36   :  { %371 = vmatprep.subr.bf16.mxu1 %v1583_v37 }
  0x37   :  { %12 = vsyncpa [#allocation3], 0  ;;  %v1585_v38 = vld [vmem:[%s2340_s3 + $0xd0] ss:$8 sps:$4 sm:$0xff]   ;;  %v1586_v39 = vld [vmem:[%s2340_s3 + $0xe4] ss:$8 sps:$4 sm:$0xff]   ;;  %v40_v8 = vlaneseq }
  0x38   :  { %v1588_v40 = vld [vmem:[%s2340_s3 + $0xe0] ss:$8 sps:$4 sm:$0xff]   ;;  %v1589_v41 = vld [vmem:[%s2340_s3 + $0xf4] ss:$8 sps:$4 sm:$0xff]   ;;  %v1591_v42 = vld [vmem:[%s2340_s3 + $0xf0] ss:$8 sps:$4 sm:$0xff]  }
  0x39   :  { %372 = vmatpush1.bf16.msra.mxu1 %v1585_v38  ;;  %v1592_v43 = vld [vmem:[%s2342_s5] ss:$28 sps:$4 sm:$0xff]   ;;  %v1597_v45 = vld [vmem:[%s2342_s5 + $0xc] ss:$28 sps:$4 sm:$0xff]   ;;  %v1598_v47 = vld [vmem:[%s2342_s5 + $0x38] ss:$28 sps:$4 sm:$0xff]  }
  0x3a   :  { %373 = vmatprep.subr.bf16.mxu1 %v1586_v39  ;;  %v1594_v44 = vld [vmem:[%s2342_s5 + $0x4] ss:$28 sps:$4 sm:$0xff]   ;;  %v1600_v46 = vld [vmem:[%s2342_s5 + $0x3c] ss:$28 sps:$4 sm:$0xff]   ;;  %v1606_v48 = vld [vmem:[%s2342_s5 + $0x74] ss:$28 sps:$4 sm:$0xff]  }
  0x3b   :  { %1133 = vmatprep.subr.bf16.mxu0 %v1594_v44  ;;  %v1604_v49 = vld [vmem:[%s2342_s5 + $0x70] ss:$28 sps:$4 sm:$0xff]   ;;  %v1610_v51 = vld [vmem:[%s2342_s5 + $0xa8] ss:$28 sps:$4 sm:$0xff]   ;;  %v1616_v53 = vld [vmem:[%s2342_s5 + $0xe0] ss:$28 sps:$4 sm:$0xff]  }
  0x3c   :  { %1134 = vmatpush1.bf16.msra.mxu0 %v1592_v43  ;;  %v1612_v50 = vld [vmem:[%s2342_s5 + $0xac] ss:$28 sps:$4 sm:$0xff]   ;;  %v1618_v52 = vld [vmem:[%s2342_s5 + $0xe4] ss:$28 sps:$4 sm:$0xff]   ;;  %v1624_v54 = vld [vmem:[%s2342_s5 + $0x11c] ss:$28 sps:$4 sm:$0xff]  }
  0x3d   :  { %374 = vmatpush1.bf16.msra.mxu1 %v1588_v40  ;;  %1135 = vmatprep.subr.bf16.mxu0 %v1600_v46  ;;  %v1622_v55 = vld [vmem:[%s2342_s5 + $0x118] ss:$28 sps:$4 sm:$0xff]   ;;  %v1628_v57 = vld [vmem:[%s2342_s5 + $0x150] ss:$28 sps:$4 sm:$0xff]   ;;  %v1634_v59 = vld [vmem:[%s2342_s5 + $0x188] ss:$28 sps:$4 sm:$0xff]  }
  0x3e   :  { %375 = vmatprep.subr.bf16.mxu1 %v1589_v41  ;;  %v1630_v56 = vld [vmem:[%s2342_s5 + $0x154] ss:$28 sps:$4 sm:$0xff]   ;;  %v1636_v58 = vld [vmem:[%s2342_s5 + $0x18c] ss:$28 sps:$4 sm:$0xff]   ;;  %v1642_v60 = vld [vmem:[%s2342_s5 + $0x1c4] ss:$28 sps:$4 sm:$0xff]  }
  0x3f   :  { %v1640_v61 = vld [vmem:[%s2342_s5 + $0x1c0] ss:$28 sps:$4 sm:$0xff]   ;;  %v1646_v63 = vld [vmem:[%s2342_s5 + $0x1f8] ss:$28 sps:$4 sm:$0xff]   ;;  %v1652_v1 = vld [vmem:[%s2342_s5 + $0x230] ss:$28 sps:$4 sm:$0xff]  }
  0x40   :  { %1136 = vmatpush1.bf16.msra.mxu0 %v1598_v47  ;;  %v1648_v62 = vld [vmem:[%s2342_s5 + $0x1fc] ss:$28 sps:$4 sm:$0xff]   ;;  %v1654_v0 = vld [vmem:[%s2342_s5 + $0x234] ss:$28 sps:$4 sm:$0xff]   ;;  %v1660_v2 = vld [vmem:[%s2342_s5 + $0x26c] ss:$28 sps:$4 sm:$0xff]  }
  0x41   :  { %376 = vmatpush1.bf16.msra.mxu1 %v1591_v42  ;;  %1137 = vmatprep.subr.bf16.mxu0 %v1606_v48  ;;  %v1658_v3 = vld [vmem:[%s2342_s5 + $0x268] ss:$28 sps:$4 sm:$0xff]   ;;  %v1664_v5 = vld [vmem:[%s2342_s5 + $0x2a0] ss:$28 sps:$4 sm:$0xff]   ;;  %v1670_v7 = vld [vmem:[%s2342_s5 + $0x2d8] ss:$28 sps:$4 sm:$0xff]  }
  0x42   :  { %1174 = vmatprep.subr.bf16.mxu1 %v1597_v45  ;;  %v1666_v4 = vld [vmem:[%s2342_s5 + $0x2a4] ss:$28 sps:$4 sm:$0xff]   ;;  %v1672_v6 = vld [vmem:[%s2342_s5 + $0x2dc] ss:$28 sps:$4 sm:$0xff]   ;;  %v2042_v9 = vshrl.u32 %v40_v8, 7  ;;  %vm1335_vm1 = vcmask 125952  }
  0x43   :  { %v38_v11 = vld [vmem:[%s2339_s2] sm:$0x3]  ;;  %v1595_v26 = vld [vmem:[%s2342_s5 + $0x8] ss:$28 sps:$4 sm:$0xff]   ;;  %v1609_v30 = vld [vmem:[%s2342_s5 + $0x7c] ss:$28 sps:$4 sm:$0xff]  }
  0x44   :  { %1138 = vmatpush1.bf16.msra.mxu0 %v1604_v49  ;;  %v2045_v10 = vsub.s32 0, %v2042_v9  ;;  %v2051_v12 = vsub.s32 1, %v2042_v9  ;;  %v1603_v28 = vld [vmem:[%s2342_s5 + $0x44] ss:$28 sps:$4 sm:$0xff]   ;;  %v1607_v31 = vld [vmem:[%s2342_s5 + $0x78] ss:$28 sps:$4 sm:$0xff]  }
  0x45   :  { %1139 = vmatprep.subr.bf16.mxu0 %v1612_v50  ;;  %v1601_v29 = vld [vmem:[%s2342_s5 + $0x40] ss:$28 sps:$4 sm:$0xff]   ;;  %v1615_v32 = vld [vmem:[%s2342_s5 + $0xb4] ss:$28 sps:$4 sm:$0xff]   ;;  %v1621_v34 = vld [vmem:[%s2342_s5 + $0xec] ss:$28 sps:$4 sm:$0xff]  }
  0x46   :  { %v43_v13 = vrot.slane %v38_v11, %v2045_v10  ;;  %v47_v14 = vrot.slane %v38_v11, %v2051_v12  ;;  %v1613_v33 = vld [vmem:[%s2342_s5 + $0xb0] ss:$28 sps:$4 sm:$0xff]   ;;  %v1619_v35 = vld [vmem:[%s2342_s5 + $0xe8] ss:$28 sps:$4 sm:$0xff]   ;;  %v1625_v37 = vld [vmem:[%s2342_s5 + $0x120] ss:$28 sps:$4 sm:$0xff]  }
  0x47   :  { %v1627_v36 = vld [vmem:[%s2342_s5 + $0x124] ss:$28 sps:$4 sm:$0xff]   ;;  %v1633_v38 = vld [vmem:[%s2342_s5 + $0x15c] ss:$28 sps:$4 sm:$0xff]   ;;  %v1639_v40 = vld [vmem:[%s2342_s5 + $0x194] ss:$28 sps:$4 sm:$0xff]  }
  0x48   :  { %1140 = vmatpush1.bf16.msra.mxu0 %v1610_v51  ;;  %v1631_v39 = vld [vmem:[%s2342_s5 + $0x158] ss:$28 sps:$4 sm:$0xff]   ;;  %v1637_v41 = vld [vmem:[%s2342_s5 + $0x190] ss:$28 sps:$4 sm:$0xff]   ;;  %v1643_v43 = vld [vmem:[%s2342_s5 + $0x1c8] ss:$28 sps:$4 sm:$0xff]  }
  0x49   :  { %1141 = vmatprep.subr.bf16.mxu0 %v1618_v52  ;;  %v1645_v42 = vld [vmem:[%s2342_s5 + $0x1cc] ss:$28 sps:$4 sm:$0xff]   ;;  %v1651_v44 = vld [vmem:[%s2342_s5 + $0x204] ss:$28 sps:$4 sm:$0xff]   ;;  %v1657_v46 = vld [vmem:[%s2342_s5 + $0x23c] ss:$28 sps:$4 sm:$0xff]  }
  0x4a   :  { %v1649_v45 = vld [vmem:[%s2342_s5 + $0x200] ss:$28 sps:$4 sm:$0xff]   ;;  %v1655_v47 = vld [vmem:[%s2342_s5 + $0x238] ss:$28 sps:$4 sm:$0xff]   ;;  %v1661_v49 = vld [vmem:[%s2342_s5 + $0x270] ss:$28 sps:$4 sm:$0xff]  }
  0x4b   :  { %v1663_v48 = vld [vmem:[%s2342_s5 + $0x274] ss:$28 sps:$4 sm:$0xff]   ;;  %v1669_v50 = vld [vmem:[%s2342_s5 + $0x2ac] ss:$28 sps:$4 sm:$0xff]   ;;  %v1675_v52 = vld [vmem:[%s2342_s5 + $0x2e4] ss:$28 sps:$4 sm:$0xff]  }
  0x4c   :  { %1142 = vmatpush1.bf16.msra.mxu0 %v1616_v53  ;;  %v1667_v51 = vld [vmem:[%s2342_s5 + $0x2a8] ss:$28 sps:$4 sm:$0xff]   ;;  %v1673_v53 = vld [vmem:[%s2342_s5 + $0x2e0] ss:$28 sps:$4 sm:$0xff]  }
  0x4d   :  { %1143 = vmatprep.subr.bf16.mxu0 %v1624_v54  ;;  %v1678_v54 = vld [vmem:[%s2342_s5 + $0x314] ss:$28 sps:$4 sm:$0xff]  }
  0x50   :  { %1144 = vmatpush1.bf16.msra.mxu0 %v1622_v55  ;;  %v1681_v55 = vld [vmem:[%s2342_s5 + $0x31c] ss:$28 sps:$4 sm:$0xff]  }
  0x51   :  { %1145 = vmatprep.subr.bf16.mxu0 %v1630_v56  ;;  %v1676_v56 = vld [vmem:[%s2342_s5 + $0x310] ss:$28 sps:$4 sm:$0xff]  }
  0x54   :  { %1146 = vmatpush1.bf16.msra.mxu0 %v1628_v57  ;;  %v1679_v57 = vld [vmem:[%s2342_s5 + $0x318] ss:$28 sps:$4 sm:$0xff]  }
  0x55   :  { %1147 = vmatprep.subr.bf16.mxu0 %v1636_v58  ;;  %v1684_v58 = vld [vmem:[%s2342_s5 + $0x34c] ss:$28 sps:$4 sm:$0xff]  }
  0x58   :  { %1148 = vmatpush1.bf16.msra.mxu0 %v1634_v59  ;;  %v1687_v59 = vld [vmem:[%s2342_s5 + $0x354] ss:$28 sps:$4 sm:$0xff]  }
  0x59   :  { %1149 = vmatprep.subr.bf16.mxu0 %v1642_v60  ;;  %v1682_v60 = vld [vmem:[%s2342_s5 + $0x348] ss:$28 sps:$4 sm:$0xff]  }
  0x5c   :  { %1150 = vmatpush1.bf16.msra.mxu0 %v1640_v61  ;;  %v1685_v61 = vld [vmem:[%s2342_s5 + $0x350] ss:$28 sps:$4 sm:$0xff]  }
  0x5d   :  { %1151 = vmatprep.subr.bf16.mxu0 %v1648_v62  ;;  %v1690_v62 = vld [vmem:[%s2342_s5 + $0x14] ss:$28 sps:$4 sm:$0xff]  }
  0x60   :  { %1152 = vmatpush1.bf16.msra.mxu0 %v1646_v63  ;;  %v1691_v63 = vld [vmem:[%s2342_s5 + $0x1d8] ss:$28 sps:$4 sm:$0xff]  }
  0x61   :  { %1153 = vmatprep.subr.bf16.mxu0 %v1654_v0  ;;  %v173_v0 = vld [vmem:[%s2341_s4] sm:$0x3] }
  0x64   :  { %1154 = vmatpush1.bf16.msra.mxu0 %v1652_v1  ;;  %v178_v1 = vrot.slane %v173_v0, %v2045_v10 }
  0x65   :  { %1155 = vmatprep.subr.bf16.mxu0 %v1660_v2  ;;  %v182_v2 = vrot.slane %v173_v0, %v2051_v12  ;;  %v532_v0 = vsub.s32 2, %v2042_v9 }
  0x68   :  { %1156 = vmatpush1.bf16.msra.mxu0 %v1658_v3 }
  0x69   :  { %1157 = vmatprep.subr.bf16.mxu0 %v1666_v4 }
  0x6c   :  { %1158 = vmatpush1.bf16.msra.mxu0 %v1664_v5 }
  0x6d   :  { %1159 = vmatprep.subr.bf16.mxu0 %v1672_v6 }
  0x70   :  { %1160 = vmatpush1.bf16.msra.mxu0 %v1670_v7 }
  0x71   :  { %1161 = vmatprep.subr.bf16.mxu0 %v1678_v54  ;;  %v1739_v54 = vld [vmem:[%s2342_s5 + $0x27c] ss:$28 sps:$4 sm:$0xff]  }
  0x74   :  { %1162 = vmatpush1.bf16.msra.mxu0 %v1676_v56  ;;  %v1742_v56 = vld [vmem:[%s2342_s5 + $0x2b4] ss:$28 sps:$4 sm:$0xff]  }
  0x75   :  { %1163 = vmatprep.subr.bf16.mxu0 %v1684_v58  ;;  %v1745_v58 = vld [vmem:[%s2342_s5 + $0x2ec] ss:$28 sps:$4 sm:$0xff]  }
  0x78   :  { %1164 = vmatpush1.bf16.msra.mxu0 %v1682_v60  ;;  %v1748_v60 = vld [vmem:[%s2342_s5 + $0x324] ss:$28 sps:$4 sm:$0xff]  }
  0x79   :  { %1215 = vmatprep.subr.bf16.mxu0 %v1690_v62  ;;  %v1751_v62 = vld [vmem:[%s2342_s5 + $0x35c] ss:$28 sps:$4 sm:$0xff]  }
  0xe5   :  { %v128_v15 = vpop.f32.mrb[0].mxu0 }
  0xe6   :  { %v129_v16 = vadd.f32 %v128_v15, %v43_v13  ;;  %v130_v17 = vpop.f32.mrb[1].mxu0 }
  0xe7   :  { %v131_v18 = vadd.f32 %v130_v17, %v47_v14  ;;  %v132_v19 = vpop.f32.mrb[2].mxu0  ;;  %v1688_v17 = vld [vmem:[%s2342_s5 + $0x10] ss:$28 sps:$4 sm:$0xff]  }
  0xe8   :  { %v135_v20 = vmul.f32 0.01, %v129_v16  ;;  %v133_v21 = vpop.f32.mrb[3].mxu0 }
  0xe9   :  { %v136_v22 = vmul.f32 0.01, %v131_v18  ;;  %v1696_v21 = vld [vmem:[%s2342_s5 + $0x210] ss:$28 sps:$4 sm:$0xff]  }
  0xea   :  { %v137_v23 = vmax.f32 %v129_v16, %v135_v20  ;;  %v1695_v20 = vld [vmem:[%s2342_s5 + $0x4c] ss:$28 sps:$4 sm:$0xff]  }
  0xeb   :  { %v138_v24 = vmax.f32 %v131_v18, %v136_v22  ;;  %v1692_v18 = vld [vmem:[%s2342_s5 + $0x18] ss:$28 sps:$4 sm:$0xff]   ;;  %v1693_v22 = vld [vmem:[%s2342_s5 + $0x48] ss:$28 sps:$4 sm:$0xff]  }
  0xec   :  { %v139_v27 = vpack.c.bf16 %v137_v23, %v137_v23  ;;  %v1697_v23 = vld [vmem:[%s2342_s5 + $0x50] ss:$28 sps:$4 sm:$0xff]  }
  0xed   :  { %v140_v25 = vpack.c.bf16 %v138_v24, %v138_v24  ;;  %v1700_v24 = vld [vmem:[%s2342_s5 + $0x84] ss:$28 sps:$4 sm:$0xff]  }
  0xef   :  { %377 = vmatprep.mubr.bf16.mxu1 %v140_v25  ;;  %v1701_v25 = vld [vmem:[%s2342_s5 + $0x248] ss:$28 sps:$4 sm:$0xff]  }
  0xf0   :  { %378 = vmatmul.mubr.bf16.vlgmr.msra.gmra.mrb[0].mxu1 %v139_v27  ;;  %v1702_v27 = vld [vmem:[%s2342_s5 + $0x88] ss:$28 sps:$4 sm:$0xff]  }
  0xf1   :  { %1175 = vmatpush1.bf16.msra.mxu1 %v1595_v26  ;;  %v1698_v26 = vld [vmem:[%s2342_s5 + $0x80] ss:$28 sps:$4 sm:$0xff]  }
  0xf2   :  { %1176 = vmatprep.subr.bf16.mxu1 %v1603_v28  ;;  %v1705_v28 = vld [vmem:[%s2342_s5 + $0xbc] ss:$28 sps:$4 sm:$0xff]  }
  0xf5   :  { %1177 = vmatpush1.bf16.msra.mxu1 %v1601_v29  ;;  %v1706_v29 = vld [vmem:[%s2342_s5 + $0x280] ss:$28 sps:$4 sm:$0xff]  }
  0xf6   :  { %1178 = vmatprep.subr.bf16.mxu1 %v1609_v30  ;;  %v1703_v30 = vld [vmem:[%s2342_s5 + $0xb8] ss:$28 sps:$4 sm:$0xff]  }
  0xf9   :  { %1179 = vmatpush1.bf16.msra.mxu1 %v1607_v31  ;;  %v1707_v31 = vld [vmem:[%s2342_s5 + $0xc0] ss:$28 sps:$4 sm:$0xff]  }
  0xfa   :  { %1180 = vmatprep.subr.bf16.mxu1 %v1615_v32  ;;  %v1710_v32 = vld [vmem:[%s2342_s5 + $0xf4] ss:$28 sps:$4 sm:$0xff]  }
  0xfd   :  { %1181 = vmatpush1.bf16.msra.mxu1 %v1613_v33  ;;  %v1711_v33 = vld [vmem:[%s2342_s5 + $0x2b8] ss:$28 sps:$4 sm:$0xff]  }
  0xfe   :  { %1182 = vmatprep.subr.bf16.mxu1 %v1621_v34  ;;  %v1708_v34 = vld [vmem:[%s2342_s5 + $0xf0] ss:$28 sps:$4 sm:$0xff]  }
 0x101   :  { %1183 = vmatpush1.bf16.msra.mxu1 %v1619_v35  ;;  %v1712_v35 = vld [vmem:[%s2342_s5 + $0xf8] ss:$28 sps:$4 sm:$0xff]  }
 0x102   :  { %1184 = vmatprep.subr.bf16.mxu1 %v1627_v36  ;;  %v1715_v36 = vld [vmem:[%s2342_s5 + $0x12c] ss:$28 sps:$4 sm:$0xff]  }
 0x105   :  { %1185 = vmatpush1.bf16.msra.mxu1 %v1625_v37  ;;  %v1716_v37 = vld [vmem:[%s2342_s5 + $0x2f0] ss:$28 sps:$4 sm:$0xff]  }
 0x106   :  { %1186 = vmatprep.subr.bf16.mxu1 %v1633_v38  ;;  %v1713_v38 = vld [vmem:[%s2342_s5 + $0x128] ss:$28 sps:$4 sm:$0xff]  }
 0x109   :  { %1187 = vmatpush1.bf16.msra.mxu1 %v1631_v39  ;;  %v1717_v39 = vld [vmem:[%s2342_s5 + $0x130] ss:$28 sps:$4 sm:$0xff]  }
 0x10a   :  { %1188 = vmatprep.subr.bf16.mxu1 %v1639_v40  ;;  %v1720_v40 = vld [vmem:[%s2342_s5 + $0x164] ss:$28 sps:$4 sm:$0xff]  }
 0x10d   :  { %1189 = vmatpush1.bf16.msra.mxu1 %v1637_v41  ;;  %v1721_v41 = vld [vmem:[%s2342_s5 + $0x328] ss:$28 sps:$4 sm:$0xff]  }
 0x10e   :  { %1190 = vmatprep.subr.bf16.mxu1 %v1645_v42  ;;  %v1718_v42 = vld [vmem:[%s2342_s5 + $0x160] ss:$28 sps:$4 sm:$0xff]  }
 0x111   :  { %1191 = vmatpush1.bf16.msra.mxu1 %v1643_v43  ;;  %v1722_v43 = vld [vmem:[%s2342_s5 + $0x168] ss:$28 sps:$4 sm:$0xff]  }
 0x112   :  { %1192 = vmatprep.subr.bf16.mxu1 %v1651_v44  ;;  %v1725_v44 = vld [vmem:[%s2342_s5 + $0x19c] ss:$28 sps:$4 sm:$0xff]  }
 0x115   :  { %1193 = vmatpush1.bf16.msra.mxu1 %v1649_v45  ;;  %v1726_v45 = vld [vmem:[%s2342_s5 + $0x360] ss:$28 sps:$4 sm:$0xff]  }
 0x116   :  { %1194 = vmatprep.subr.bf16.mxu1 %v1657_v46  ;;  %v1723_v46 = vld [vmem:[%s2342_s5 + $0x198] ss:$28 sps:$4 sm:$0xff]  }
 0x119   :  { %1195 = vmatpush1.bf16.msra.mxu1 %v1655_v47  ;;  %v1727_v47 = vld [vmem:[%s2342_s5 + $0x1a0] ss:$28 sps:$4 sm:$0xff]  }
 0x11a   :  { %1196 = vmatprep.subr.bf16.mxu1 %v1663_v48  ;;  %v1730_v48 = vld [vmem:[%s2342_s5 + $0x1d4] ss:$28 sps:$4 sm:$0xff]  }
 0x11d   :  { %1197 = vmatpush1.bf16.msra.mxu1 %v1661_v49  ;;  %v1728_v49 = vld [vmem:[%s2342_s5 + $0x1d0] ss:$28 sps:$4 sm:$0xff]  }
 0x11e   :  { %1198 = vmatprep.subr.bf16.mxu1 %v1669_v50  ;;  %v1733_v50 = vld [vmem:[%s2342_s5 + $0x20c] ss:$28 sps:$4 sm:$0xff]  }
 0x121   :  { %1199 = vmatpush1.bf16.msra.mxu1 %v1667_v51  ;;  %v1731_v51 = vld [vmem:[%s2342_s5 + $0x208] ss:$28 sps:$4 sm:$0xff]  }
 0x122   :  { %1200 = vmatprep.subr.bf16.mxu1 %v1675_v52  ;;  %v1736_v52 = vld [vmem:[%s2342_s5 + $0x244] ss:$28 sps:$4 sm:$0xff]  }
 0x125   :  { %1201 = vmatpush1.bf16.msra.mxu1 %v1673_v53  ;;  %v1734_v53 = vld [vmem:[%s2342_s5 + $0x240] ss:$28 sps:$4 sm:$0xff]  }
 0x126   :  { %1202 = vmatprep.subr.bf16.mxu1 %v1681_v55  ;;  %v1737_v55 = vld [vmem:[%s2342_s5 + $0x278] ss:$28 sps:$4 sm:$0xff]  }
 0x129   :  { %1203 = vmatpush1.bf16.msra.mxu1 %v1679_v57  ;;  %v1740_v57 = vld [vmem:[%s2342_s5 + $0x2b0] ss:$28 sps:$4 sm:$0xff]  }
 0x12a   :  { %1204 = vmatprep.subr.bf16.mxu1 %v1687_v59  ;;  %v1743_v59 = vld [vmem:[%s2342_s5 + $0x2e8] ss:$28 sps:$4 sm:$0xff]  }
 0x12d   :  { %1205 = vmatpush1.bf16.msra.mxu1 %v1685_v61  ;;  %v1746_v61 = vld [vmem:[%s2342_s5 + $0x320] ss:$28 sps:$4 sm:$0xff]  }
 0x12e   :  { %1508 = vmatprep.subr.bf16.mxu1 %v1691_v63  ;;  %v1749_v63 = vld [vmem:[%s2342_s5 + $0x358] ss:$28 sps:$4 sm:$0xff]   ;;  %s1791_s5 = smov [#allocation2]  }
 0x1c3   :  { %v379_v3 = vpop.f32.mrb[0].mxu1 }
 0x1c4   :  { %v380_v4 = vadd.f32 %v379_v3, %v178_v1  ;;  %v381_v5 = vpop.f32.mrb[1].mxu1  ;;  %v520_v1 = vld [vmem:[%s2343_s6] sm:$0x7f]  ;;  %s1343_s6 = sshll.u32 %s1791_s5, 4  ;;  %s1344_s6 = int_to_ptr.vmem [resolvable:$true] %s1343_s6 }
 0x1c5   :  { %v382_v6 = vadd.f32 %v381_v5, %v182_v2  ;;  %v383_v7 = vpop.f32.mrb[2].mxu1  ;;  %v536_v2 = vsub.s32 3, %v2042_v9  ;;  %v525_v3 = vrot.slane %v520_v1, %v2045_v10  ;;  %v529_v5 = vrot.slane %v520_v1, %v2051_v12  ;;  %s1766_s18 = scalar_lea.vmem %s1344_s6, 448  ;;  %p1771_p1 = scmp.lt.s32.totalorder %s1344_s6, %s1344_s6 }
 0x1c6   :  { %v386_v8 = vmul.f32 0.01, %v380_v4  ;;  %v384_v11 = vpop.f32.mrb[3].mxu1  ;;  %p1767_p0 = scmp.ne.s32.totalorder %s1344_s6, %s1766_s18  ;;  %p1772_p2 = scmp.lt.s32.totalorder %s1766_s18, %s1766_s18 }
 0x1c7   :  { %v387_v13 = vmul.f32 0.01, %v382_v6 }
 0x1c8   :  { %v388_v14 = vmax.f32 %v380_v4, %v386_v8  ;;  %v533_v4 = vrot.slane %v520_v1, %v532_v0  ;;  %p1773_p3 = por %p1772_p2, %p1771_p1 }
 0x1c9   :  { %v389_v15 = vmax.f32 %v382_v6, %v387_v13  ;;  %v537_v6 = vrot.slane %v520_v1, %v536_v2 }
 0x1ca   :  { %v2177_v19 = vpack.c.bf16 %v388_v14, %v388_v14  ;;  %p1774_p4 = pnand %p1773_p3, %p1767_p0 }
 0x1cb   :  { %v391_v16 = vpack.c.bf16 %v389_v15, %v389_v15 }
 0x1cd   :  { %1165 = vmatprep.mubr.bf16.mxu0 %v391_v16  ;;  %1206 = vmatprep.mubr.bf16.mxu1 %v391_v16 }
 0x1ce   :  { %1166 = vmatmul.mubr.bf16.vlgmr.msra.gmra.mrb[4].mxu0 %v2177_v19  ;;  %1207 = vmatmul.mubr.bf16.vlgmr.msra.gmra.mrb[4].mxu1 %v2177_v19 }
 0x1cf   :  { %1216 = vmatpush1.bf16.msra.mxu0 %v1688_v17  ;;  %1509 = vmatpush3.bf16.msra.mxu1 %v1692_v18 }
 0x1d0   :  { %1247 = vmatprep.mubr.bf16.mxu0 %v391_v16  ;;  %1288 = vmatprep.mubr.bf16.mxu1 %v391_v16 }
 0x1d1   :  { %1217 = vmatprep.subr.bf16.mxu0 %v1695_v20  ;;  %1510 = vmatprep.subr.bf16.mxu1 %v1696_v21 }
 0x1d3   :  { %1218 = vmatpush1.bf16.msra.mxu0 %v1693_v22  ;;  %1511 = vmatpush3.bf16.msra.mxu1 %v1697_v23 }
 0x1d4   :  { %1219 = vmatprep.subr.bf16.mxu0 %v1700_v24  ;;  %1512 = vmatprep.subr.bf16.mxu1 %v1701_v25 }
 0x1d7   :  { %1220 = vmatpush1.bf16.msra.mxu0 %v1698_v26  ;;  %1513 = vmatpush3.bf16.msra.mxu1 %v1702_v27 }
 0x1d8   :  { %1221 = vmatprep.subr.bf16.mxu0 %v1705_v28  ;;  %1514 = vmatprep.subr.bf16.mxu1 %v1706_v29 }
 0x1db   :  { %1222 = vmatpush1.bf16.msra.mxu0 %v1703_v30  ;;  %1515 = vmatpush3.bf16.msra.mxu1 %v1707_v31  ;;  %v548_v30 = vsub.s32 6, %v2042_v9 }
 0x1dc   :  { %1223 = vmatprep.subr.bf16.mxu0 %v1710_v32  ;;  %1516 = vmatprep.subr.bf16.mxu1 %v1711_v33 }
 0x1dd   :  { %v549_v32 = vrot.slane %v520_v1, %v548_v30 }
 0x1df   :  { %1224 = vmatpush1.bf16.msra.mxu0 %v1708_v34  ;;  %1517 = vmatpush3.bf16.msra.mxu1 %v1712_v35 }
 0x1e0   :  { %1225 = vmatprep.subr.bf16.mxu0 %v1715_v36  ;;  %1518 = vmatprep.subr.bf16.mxu1 %v1716_v37 }
 0x1e3   :  { %1226 = vmatpush1.bf16.msra.mxu0 %v1713_v38  ;;  %1519 = vmatpush3.bf16.msra.mxu1 %v1717_v39 }
 0x1e4   :  { %1227 = vmatprep.subr.bf16.mxu0 %v1720_v40  ;;  %1520 = vmatprep.subr.bf16.mxu1 %v1721_v41  ;;  %v540_v41 = vsub.s32 4, %v2042_v9 }
 0x1e7   :  { %1228 = vmatpush1.bf16.msra.mxu0 %v1718_v42  ;;  %1521 = vmatpush3.bf16.msra.mxu1 %v1722_v43  ;;  %v544_v42 = vsub.s32 5, %v2042_v9  ;;  %v541_v43 = vrot.slane %v520_v1, %v540_v41 }
 0x1e8   :  { %1229 = vmatprep.subr.bf16.mxu0 %v1725_v44  ;;  %1522 = vmatprep.subr.bf16.mxu1 %v1726_v45 }
 0x1e9   :  { %v545_v44 = vrot.slane %v520_v1, %v544_v42 }
 0x1eb   :  { %1230 = vmatpush1.bf16.msra.mxu0 %v1723_v46  ;;  %1523 = vmatpush3.bf16.msra.mxu1 %v1727_v47 }
 0x1ec   :  { %1231 = vmatprep.subr.bf16.mxu0 %v1730_v48 }
 0x1ee   :  { %1289 = vmatmul.mubr.bf16.vlgmr.msra.gmra.mrb[8].mxu1 %v2177_v19 }
 0x1ef   :  { %1232 = vmatpush1.bf16.msra.mxu0 %v1728_v49 }
 0x1f0   :  { %1233 = vmatprep.subr.bf16.mxu0 %v1733_v50 }
 0x1f3   :  { %1234 = vmatpush1.bf16.msra.mxu0 %v1731_v51 }
 0x1f4   :  { %1235 = vmatprep.subr.bf16.mxu0 %v1736_v52 }
 0x1f7   :  { %1236 = vmatpush1.bf16.msra.mxu0 %v1734_v53 }
 0x1f8   :  { %1237 = vmatprep.subr.bf16.mxu0 %v1739_v54 }
 0x1fb   :  { %1238 = vmatpush1.bf16.msra.mxu0 %v1737_v55 }
 0x1fc   :  { %1239 = vmatprep.subr.bf16.mxu0 %v1742_v56 }
 0x1ff   :  { %1240 = vmatpush1.bf16.msra.mxu0 %v1740_v57 }
 0x200   :  { %1241 = vmatprep.subr.bf16.mxu0 %v1745_v58 }
 0x203   :  { %1242 = vmatpush1.bf16.msra.mxu0 %v1743_v59 }
 0x204   :  { %1243 = vmatprep.subr.bf16.mxu0 %v1748_v60 }
 0x207   :  { %1244 = vmatpush1.bf16.msra.mxu0 %v1746_v61 }
 0x208   :  { %1245 = vmatprep.subr.bf16.mxu0 %v1751_v62 }
 0x20b   :  { %1246 = vmatpush1.bf16.msra.mxu0 %v1749_v63 }
 0x20e   :  { %1248 = vmatmul.mubr.bf16.vlgmr.msra.gmra.mrb[8].mxu0 %v2177_v19 }
 0x2a1   :  { %v1167_v7 = vpop.f32.mrb[4].mxu0  ;;  %v1208_v8 = vpop.f32.mrb[4].mxu1 }
 0x2a2   :  { %v1168_v11 = vadd.f32 %v1167_v7, %v525_v3  ;;  %v1209_v13 = vadd.f32 %v1208_v8, %v533_v4  ;;  %v1169_v14 = vpop.f32.mrb[5].mxu0  ;;  %v1210_v15 = vpop.f32.mrb[5].mxu1 }
 0x2a3   :  { %v1170_v16 = vadd.f32 %v1169_v14, %v529_v5  ;;  %v1211_v17 = vadd.f32 %v1210_v15, %v537_v6  ;;  %v1171_v18 = vpop.f32.mrb[6].mxu0  ;;  %v1212_v19 = vpop.f32.mrb[6].mxu1 }
 0x2a4   :  { %v1296_v20 = vpack.c.bf16 %v1168_v11, %v1168_v11  ;;  %v1298_v21 = vpack.c.bf16 %v1209_v13, %v1209_v13  ;;  %v1172_v22 = vpop.f32.mrb[7].mxu0  ;;  %v1213_v23 = vpop.f32.mrb[7].mxu1 }
 0x2a5   :  { %v1297_v24 = vpack.c.bf16 %v1170_v16, %v1170_v16  ;;  %v1299_v10 = vpack.c.bf16 %v1211_v17, %v1211_v17 }
 0x2a6   :  { %1752 = vtanh.bf16 %v1296_v20 }
 0x2a7   :  { %1754 = vtanh.bf16 %v1298_v21 }
 0x2a8   :  { %1756 = vtanh.bf16 %v1297_v24 }
 0x2a9   :  { %1758 = vtanh.bf16 %v1299_v10 }
 0x2b1   :  { %v1753_v12 = vpop.eup %1752 }
 0x2b2   :  { %v1755_v25 = vpop.eup %1754 }
 0x2b3   :  { %v1757_v26 = vpop.eup %1756 }
 0x2b4   :  { %v1759_v27 = vpop.eup %1758  ;;  %v1504_v28 = vcombine.low %v1753_v12, %v1757_v26 }
 0x2b5   :  { %v1505_v29 = vcombine.low %v1755_v25, %v1759_v27 }
 0x2b6   :  { %1332 = vst [vmem:[#allocation2] sm:$0xff] %v1504_v28 }
 0x2b7   :  { %1333 = vst [vmem:[#allocation2 + $0x8] sm:$0xff] %v1505_v29 }
 0x2c1   :  { %v1524_v31 = vpop.f32.mrb[8].mxu1 }
 0x2c2   :  { %v1525_v33 = vpop.f32.mrb[9].mxu1 }
 0x2c3   :  { %v1526_v34 = vadd.f32 %v1525_v33, %v1524_v31  ;;  %v1527_v35 = vpop.f32.mrb[10].mxu1 }
 0x2c4   :  { %v1528_v36 = vpop.f32.mrb[11].mxu1 }
 0x2c5   :  { %v1291_v37 = vadd.f32 %v1526_v34, %v549_v32 }
 0x2c7   :  { %v1302_v38 = vpack.c.bf16 %v1291_v37, %v1291_v37 }
 0x2c9   :  { %1760 = vtanh.bf16 %v1302_v38 }
 0x2d4   :  { %v1761_v39 = vpop.eup %1760 }
 0x2d5   :  { %v1507_v40 = vcombine.low %v1761_v39, %v1761_v39 }
 0x2d7   :  { %1336 = vst.msk [vmem:[#allocation2 + $0x18] sm:$0xf] %vm1335_vm1, %v1507_v40 }
 0x2e1   :  { %v1249_v45 = vpop.f32.mrb[8].mxu0 }
 0x2e2   :  { %v1250_v46 = vadd.f32 %v1249_v45, %v541_v43  ;;  %v1251_v47 = vpop.f32.mrb[9].mxu0 }
 0x2e3   :  { %v1252_v48 = vadd.f32 %v1251_v47, %v545_v44  ;;  %v1253_v49 = vpop.f32.mrb[10].mxu0 }
 0x2e4   :  { %v1300_v50 = vpack.c.bf16 %v1250_v46, %v1250_v46  ;;  %v1254_v51 = vpop.f32.mrb[11].mxu0 }
 0x2e5   :  { %v1301_v52 = vpack.c.bf16 %v1252_v48, %v1252_v48 }
 0x2e6   :  { %1762 = vtanh.bf16 %v1300_v50 }
 0x2e7   :  { %1764 = vtanh.bf16 %v1301_v52 }
 0x2f1   :  { %v1763_v53 = vpop.eup %1762 }
 0x2f2   :  { %v1765_v54 = vpop.eup %1764 }
 0x2f3   :  { %v1506_v55 = vcombine.low %v1763_v53, %v1765_v54 }
 0x2f5   :  { %1334 = vst [vmem:[#allocation2 + $0x10] sm:$0xff] %v1506_v55 }
 0x2f6   :  { %1777 = shalt.err (!%p1774_p4)
}
 0x2f7   :  { %s1778_s21 = scalar_lea.hbm %s2344_s7, 448 }
 0x2f8   :  { %p1779_p5 = scmp.ne.s32.totalorder %s2344_s7, %s1778_s21  ;;  %p1782_p6 = scmp.lt.u32.totalorder %s1778_s21, %s2344_s7 }
 0x2fa   :  { %p1784_p7 = pnand %p1782_p6, %p1779_p5 }
 0x2fc   :  { %1787 = shalt.err (!%p1784_p7)
}
 0x2fd   :  { %1346 = dma.vmem_to_hbm [thread:$0]  %s1344_s6, 448, %s2344_s7, [#allocation3]  }
 0x2fe   :  { %1788 = dma.done.wait [#allocation3], 448  }
 0x2ff   :  { %1789 = vsyncadd [#allocation3], 4294966848 }
 0x300   :  { %1350 = vsyncpa [#allocation3], 1 }

</bundles_post_ra>
